<compile_context>
chip_gen: v5e
topology: v5e:2x2
jax: 0.10.0
libtpu: 0.0.40
codegen_flags: <defaults>
</compile_context>

<pallas_src>
import functools
import math

import jax
import jax.numpy as jnp
import numpy as np
from jax.experimental import pallas as pl
from jax.experimental.pallas import tpu as pltpu


def _round_up(x: int, m: int) -> int:
    return ((x + m - 1) // m) * m


def plrnn_kernel(x_ref, p_ref, a_ref, w1t_ref, w2t_ref, h1_ref, h2_ref,
                 z_out_ref, z_carry, *, tf_alpha: float):
    """One grid step == one (batch tile, time block) of the recurrence.

    x_ref    : (T_BLK, B_TILE, Dx)      time-major forcing block (real lanes only)
    p_ref    : (Dx, Dz_pad)             0/1 placement matrix (eye)
    a_ref    : (1, Dz_pad)              diagonal A (zero in padded lanes)
    w1t_ref  : (Dy, Dz_pad)             W1^T (zero cols in padded lanes)
    w2t_ref  : (Dz_pad, Dy)             W2^T (zero rows in padded lanes)
    h1_ref   : (1, Dz_pad)
    h2_ref   : (1, Dy)
    z_out_ref: (T_BLK, B_TILE, Dz_pad)  output slab for this block
    z_carry  : (B_TILE, Dz_pad)         VMEM scratch carrying z across time blocks
    """
    t_idx = pl.program_id(1)            # time-block index (innermost, sequential)

    # Fresh recurrence for every batch tile.
    @pl.when(t_idx == 0)
    def _():
        z_carry[...] = jnp.zeros_like(z_carry)

    t_blk, b_tile, dim_x = x_ref.shape
    dz_pad = z_carry.shape[-1]

    a = a_ref[...]                      # (1, Dz_pad)
    w1t = w1t_ref[...]                  # (Dy, Dz_pad)
    w2t = w2t_ref[...]                  # (Dz_pad, Dy)
    h1 = h1_ref[...]                    # (1, Dz_pad)
    h2 = h2_ref[...]                    # (1, Dy)
    p = p_ref[...]                      # (Dx, Dz_pad)

    # Widen the forcing block from dim_x lanes to Dz_pad lanes once per block
    # via a placement matmul; lanes >= dim_x (and NaN entries) are never forced.
    x_blk = x_ref[...]                                       # (T_BLK, B, Dx)
    x2 = x_blk.reshape(t_blk * b_tile, dim_x)
    nan2 = jnp.isnan(x2)
    x_safe2 = jnp.where(nan2, 0.0, x2)
    valid2 = jnp.where(nan2, 0.0, 1.0)
    x_w = jnp.dot(x_safe2, p,
                  preferred_element_type=jnp.float32).reshape(t_blk, b_tile, dz_pad)
    v_w = jnp.dot(valid2, p,
                  preferred_element_type=jnp.float32).reshape(t_blk, b_tile, dz_pad)

    z = z_carry[...]                                         # (B, Dz_pad)

    # Statically unrolled recurrence over the time block (T_BLK is small, so
    # the scheduler sees straight-line code it can interleave).
    for i in range(t_blk):
        if i == 0:
            # Very first global step: z0-init (alpha=1) followed by per-step
            # forcing collapses to a single alpha=1 forcing of z == 0.
            alpha = jnp.where(t_idx == 0, jnp.float32(1.0), jnp.float32(tf_alpha))
        else:
            alpha = jnp.float32(tf_alpha)

        forced = v_w[i] > 0.5                                # NaN / padded lanes: False
        z = jnp.where(forced, alpha * x_w[i] + (1.0 - alpha) * z, z)

        # shallow-PLRNN step: z' = A*z + W1 @ relu(W2 @ z + h2) + h1
        pre = jnp.dot(z, w2t, preferred_element_type=jnp.float32) + h2
        act = jnp.maximum(pre, 0.0)
        z = a * z + jnp.dot(act, w1t, preferred_element_type=jnp.float32) + h1

        z_out_ref[i] = z

    z_carry[...] = z


def plrnn_forward(X, A, W1, W2, h1, h2, tf_alpha=0.125, time_block=16):
    """X: (batch, time, dim_x) float32. Returns (batch, time, dim_x)."""
    Bsz, T, Dx = X.shape
    Dz = A.shape[0]
    Dy = W2.shape[0]

    # ---- hardware-friendly padding (structural zeros; dynamics unchanged) ---
    dz_pad = _round_up(Dz, 128)                  # lane-dense z / output stores
    b_tile = min(_round_up(Bsz, 8), 128)         # f32 sublane multiple
    b_pad = _round_up(Bsz, b_tile)
    t_blk = max(1, min(int(time_block), T))
    t_pad = _round_up(T, t_blk)

    # X time-major, batch/time padded, but NOT lane-padded: the DMA only
    # carries the real dim_x lanes; the kernel widens it on-chip.
    # TODO(synk): if the producer can emit X time-major, drop this transpose.
    X_tm = jnp.transpose(X, (1, 0, 2))                             # (T, B, Dx)
    X_tm = jnp.pad(X_tm, ((0, t_pad - T), (0, b_pad - Bsz), (0, 0)))

    # Zero-padded parameters: padded latent lanes stay exactly 0 forever.
    A_p = jnp.pad(A, (0, dz_pad - Dz)).reshape(1, dz_pad)
    h1_p = jnp.pad(h1, (0, dz_pad - Dz)).reshape(1, dz_pad)
    h2_p = h2.reshape(1, Dy)
    W1t = jnp.pad(W1, ((0, dz_pad - Dz), (0, 0))).T                # (Dy, Dz_pad)
    W2t = jnp.pad(W2, ((0, 0), (0, dz_pad - Dz))).T                # (Dz_pad, Dy)
    P = jnp.eye(Dx, dz_pad, dtype=jnp.float32)                     # placement

    n_b = b_pad // b_tile
    n_t = t_pad // t_blk

    kernel = functools.partial(plrnn_kernel, tf_alpha=float(tf_alpha))

    Z_tm = pl.pallas_call(
        kernel,
        out_shape=jax.ShapeDtypeStruct((t_pad, b_pad, dz_pad), jnp.float32),
        grid_spec=pltpu.PrefetchScalarGridSpec(
            num_scalar_prefetch=0,
            grid=(n_b, n_t),
            in_specs=[
                pl.BlockSpec((t_blk, b_tile, Dx), lambda b, t: (t, b, 0)),   # X
                pl.BlockSpec((Dx, dz_pad), lambda b, t: (0, 0)),             # P
                pl.BlockSpec((1, dz_pad), lambda b, t: (0, 0)),              # A
                pl.BlockSpec((Dy, dz_pad), lambda b, t: (0, 0)),             # W1^T
                pl.BlockSpec((dz_pad, Dy), lambda b, t: (0, 0)),             # W2^T
                pl.BlockSpec((1, dz_pad), lambda b, t: (0, 0)),              # h1
                pl.BlockSpec((1, Dy), lambda b, t: (0, 0)),                  # h2
            ],
            out_specs=pl.BlockSpec((t_blk, b_tile, dz_pad), lambda b, t: (t, b, 0)),
            scratch_shapes=[pltpu.VMEM((b_tile, dz_pad), jnp.float32)],
        ),
        compiler_params=pltpu.CompilerParams(
            # batch tiles are independent (v7x dual-TC); time is sequential.
            dimension_semantics=("parallel", "arbitrary")),
    )(X_tm, P, A_p, W1t, W2t, h1_p, h2_p)

    # Slice to real sizes BEFORE transposing so the layout fixup only touches
    # the small (T, B, Dx) tensor.
    return jnp.transpose(Z_tm[:T, :Bsz, :Dx], (1, 0, 2))           # (B, T, Dx)


def plrnn_forward_ref(X, A, W1, W2, h1, h2, tf_alpha=0.125):
    """Pure-JAX reference mirroring the torch forward."""
    Bsz, T, Dx = X.shape
    Dz = A.shape[0]

    def teacher_force(z, x, alpha):
        valid = jnp.logical_not(jnp.isnan(x))
        xs = jnp.where(valid, x, 0.0)
        front = jnp.where(valid, alpha * xs + (1.0 - alpha) * z[:, :Dx], z[:, :Dx])
        return jnp.concatenate([front, z[:, Dx:]], axis=-1)

    z = teacher_force(jnp.zeros((Bsz, Dz), jnp.float32), X[:, 0], 1.0)

    def step(z, xt):
        z = teacher_force(z, xt, tf_alpha)
        z_new = A * z + jnp.maximum(z @ W2.T + h2, 0.0) @ W1.T + h1
        return z_new, z_new

    _, Zs = jax.lax.scan(step, z, jnp.transpose(X, (1, 0, 2)))
    Z = jnp.transpose(Zs, (1, 0, 2))
    return Z[:, :, :Dx]


def init_uniform(key, shape, gain=1.0):
    r = gain / math.sqrt(shape[-1])
    return jax.random.uniform(key, shape, jnp.float32, minval=-r, maxval=r)


if __name__ == "__main__":
    # Small config: batch=4, time=8, dim_x=8, dim_z=32, dim_y=64.
    Bsz, T, Dx, Dz, Dy = 4, 8, 8, 32, 64
    tf_alpha = 0.125

    key = jax.random.PRNGKey(0)
    kx, kA, kW1, kW2, kh1, kh2 = jax.random.split(key, 6)

    X = jax.random.normal(kx, (Bsz, T, Dx), jnp.float32)
    # A few missing observations to exercise the NaN-aware teacher forcing.
    X = X.at[1, 3, 2].set(jnp.nan)
    X = X.at[0, 5, :].set(jnp.nan)

    A = init_uniform(kA, (Dz,))            # (dim_z,)
    W1 = init_uniform(kW1, (Dz, Dy))       # (dim_z, dim_y)
    W2 = init_uniform(kW2, (Dy, Dz))       # (dim_y, dim_z)
    h1 = init_uniform(kh1, (Dz,))
    h2 = init_uniform(kh2, (Dy,))

    out = plrnn_forward(X, A, W1, W2, h1, h2, tf_alpha=tf_alpha)
    out = jax.block_until_ready(out)

    ref = jax.block_until_ready(
        plrnn_forward_ref(X, A, W1, W2, h1, h2, tf_alpha=tf_alpha))

    assert out.shape == (Bsz, T, Dx), out.shape
    np.testing.assert_allclose(np.asarray(out), np.asarray(ref),
                               rtol=2e-3, atol=2e-3)
    print("KERNEL_OK")
</pallas_src>

<mosaic_0001>
module attributes {stable_mosaic.version = 11 : i64} {
  func.func @plrnn_kernel(%arg0: i32, %arg1: i32, %arg2: memref<8x8x8xf32, #tpu.memory_space<vmem>>, %arg3: memref<8x128xf32, #tpu.memory_space<vmem>>, %arg4: memref<1x128xf32, #tpu.memory_space<vmem>>, %arg5: memref<64x128xf32, #tpu.memory_space<vmem>>, %arg6: memref<128x64xf32, #tpu.memory_space<vmem>>, %arg7: memref<1x128xf32, #tpu.memory_space<vmem>>, %arg8: memref<1x64xf32, #tpu.memory_space<vmem>>, %arg9: memref<8x8x128xf32, #tpu.memory_space<vmem>>, %arg10: memref<8x128xf32, #tpu.memory_space<vmem>>) attributes {dimension_semantics = [#tpu.dimension_semantics<parallel>, #tpu.dimension_semantics<arbitrary>], iteration_bounds = array<i64: 1, 1>, scalar_prefetch = 0 : i64, scratch_operands = 1 : i64, tpu.core_type = #tpu.core_type<tc>, window_params = [{transform_indices = @transform_0, window_bounds = array<i64: 8, 8, 8>}, {pipeline_mode = #tpu.pipeline_mode<synchronous>, transform_indices = @transform_1, window_bounds = array<i64: 8, 128>}, {pipeline_mode = #tpu.pipeline_mode<synchronous>, transform_indices = @transform_2, window_bounds = array<i64: 1, 128>}, {pipeline_mode = #tpu.pipeline_mode<synchronous>, transform_indices = @transform_3, window_bounds = array<i64: 64, 128>}, {pipeline_mode = #tpu.pipeline_mode<synchronous>, transform_indices = @transform_4, window_bounds = array<i64: 128, 64>}, {pipeline_mode = #tpu.pipeline_mode<synchronous>, transform_indices = @transform_5, window_bounds = array<i64: 1, 128>}, {pipeline_mode = #tpu.pipeline_mode<synchronous>, transform_indices = @transform_6, window_bounds = array<i64: 1, 64>}, {transform_indices = @transform_7, window_bounds = array<i64: 8, 8, 128>}]} {
    %c0_i32 = arith.constant 0 : i32
    %0 = arith.cmpi eq, %arg1, %c0_i32 : i32
    %1 = arith.extui %0 : i1 to i32
    %c0_i32_0 = arith.constant 0 : i32
    %2 = arith.cmpi ne, %1, %c0_i32_0 : i32
    scf.if %2 {
      %cst_97 = arith.constant 0.000000e+00 : f32
      %241 = vector.broadcast %cst_97 : f32 to vector<8x128xf32>
      %c0_98 = arith.constant 0 : index
      %c0_99 = arith.constant 0 : index
      %242 = vector.load %arg10[%c0_98, %c0_99] : memref<8x128xf32, #tpu.memory_space<vmem>>, vector<8x128xf32>
      tpu.vector_store %arg10[%c0_98, %c0_99], %241 {strides = array<i32>} : memref<8x128xf32, #tpu.memory_space<vmem>>, vector<8x128xf32>,
    } else {
    }
    %c0 = arith.constant 0 : index
    %c0_1 = arith.constant 0 : index
    %3 = vector.load %arg4[%c0, %c0_1] : memref<1x128xf32, #tpu.memory_space<vmem>>, vector<1x128xf32>
    %c0_2 = arith.constant 0 : index
    %c0_3 = arith.constant 0 : index
    %4 = vector.load %arg5[%c0_2, %c0_3] : memref<64x128xf32, #tpu.memory_space<vmem>>, vector<64x128xf32>
    %c0_4 = arith.constant 0 : index
    %c0_5 = arith.constant 0 : index
    %5 = vector.load %arg6[%c0_4, %c0_5] : memref<128x64xf32, #tpu.memory_space<vmem>>, vector<128x64xf32>
    %c0_6 = arith.constant 0 : index
    %c0_7 = arith.constant 0 : index
    %6 = vector.load %arg7[%c0_6, %c0_7] : memref<1x128xf32, #tpu.memory_space<vmem>>, vector<1x128xf32>
    %c0_8 = arith.constant 0 : index
    %c0_9 = arith.constant 0 : index
    %7 = vector.load %arg8[%c0_8, %c0_9] : memref<1x64xf32, #tpu.memory_space<vmem>>, vector<1x64xf32>
    %c0_10 = arith.constant 0 : index
    %c0_11 = arith.constant 0 : index
    %8 = vector.load %arg3[%c0_10, %c0_11] : memref<8x128xf32, #tpu.memory_space<vmem>>, vector<8x128xf32>
    %c0_12 = arith.constant 0 : index
    %c0_13 = arith.constant 0 : index
    %c0_14 = arith.constant 0 : index
    %9 = vector.load %arg2[%c0_12, %c0_13, %c0_14] : memref<8x8x8xf32, #tpu.memory_space<vmem>>, vector<8x8x8xf32>
    %10 = vector.shape_cast %9 : vector<8x8x8xf32> to vector<64x8xf32>
    %11 = arith.cmpf one, %10, %10 : vector<64x8xf32>
    %cst = arith.constant 0.000000e+00 : f32
    %12 = vector.broadcast %cst : f32 to vector<64x8xf32>
    %13 = arith.select %11, %12, %10 : vector<64x8xi1>, vector<64x8xf32>
    %cst_15 = arith.constant 0.000000e+00 : f32
    %cst_16 = arith.constant 1.000000e+00 : f32
    %14 = vector.broadcast %cst_15 : f32 to vector<64x8xf32>
    %15 = vector.broadcast %cst_16 : f32 to vector<64x8xf32>
    %16 = arith.select %11, %14, %15 : vector<64x8xi1>, vector<64x8xf32>
    %cst_17 = arith.constant dense<0.000000e+00> : vector<64x128xf32>
    %17 = tpu.matmul %13, %8, %cst_17 {dimension_numbers = #tpu.dot_dimension_numbers<[1], [0], [0], [1], [0, 0, 1, 1], [], []>} : vector<64x8xf32>, vector<8x128xf32>, vector<64x128xf32> -> vector<64x128xf32>
    %18 = vector.shape_cast %17 : vector<64x128xf32> to vector<8x8x128xf32>
    %cst_18 = arith.constant dense<0.000000e+00> : vector<64x128xf32>
    %19 = tpu.matmul %16, %8, %cst_18 {dimension_numbers = #tpu.dot_dimension_numbers<[1], [0], [0], [1], [0, 0, 1, 1], [], []>} : vector<64x8xf32>, vector<8x128xf32>, vector<64x128xf32> -> vector<64x128xf32>
    %20 = vector.shape_cast %19 : vector<64x128xf32> to vector<8x8x128xf32>
    %c0_19 = arith.constant 0 : index
    %c0_20 = arith.constant 0 : index
    %21 = vector.load %arg10[%c0_19, %c0_20] : memref<8x128xf32, #tpu.memory_space<vmem>>, vector<8x128xf32>
    %c0_i32_21 = arith.constant 0 : i32
    %22 = arith.cmpi eq, %arg1, %c0_i32_21 : i32
    %cst_22 = arith.constant 1.000000e+00 : f32
    %cst_23 = arith.constant 1.250000e-01 : f32
    %23 = arith.select %22, %cst_22, %cst_23 : f32
    %24 = vector.extract_strided_slice %20 {offsets = [0, 0, 0], sizes = [1, 8, 128], strides = [1, 1, 1]} : vector<8x8x128xf32> to vector<1x8x128xf32>
    %25 = vector.shape_cast %24 : vector<1x8x128xf32> to vector<8x128xf32>
    %cst_24 = arith.constant 5.000000e-01 : f32
    %26 = vector.broadcast %cst_24 : f32 to vector<8x128xf32>
    %27 = arith.cmpf ogt, %25, %26 : vector<8x128xf32>
    %28 = vector.extract_strided_slice %18 {offsets = [0, 0, 0], sizes = [1, 8, 128], strides = [1, 1, 1]} : vector<8x8x128xf32> to vector<1x8x128xf32>
    %29 = vector.shape_cast %28 : vector<1x8x128xf32> to vector<8x128xf32>
    %30 = vector.broadcast %23 : f32 to vector<8x128xf32>
    %31 = arith.mulf %30, %29 : vector<8x128xf32>
    %cst_25 = arith.constant 1.000000e+00 : f32
    %32 = arith.subf %cst_25, %23 : f32
    %33 = vector.broadcast %32 : f32 to vector<8x128xf32>
    %34 = arith.mulf %33, %21 : vector<8x128xf32>
    %35 = arith.addf %31, %34 : vector<8x128xf32>
    %36 = arith.select %27, %35, %21 : vector<8x128xi1>, vector<8x128xf32>
    %cst_26 = arith.constant dense<0.000000e+00> : vector<8x64xf32>
    %37 = tpu.matmul %36, %5, %cst_26 {dimension_numbers = #tpu.dot_dimension_numbers<[1], [0], [0], [1], [0, 0, 1, 1], [], []>} : vector<8x128xf32>, vector<128x64xf32>, vector<8x64xf32> -> vector<8x64xf32>
    %38 = vector.broadcast %7 : vector<1x64xf32> to vector<8x64xf32>
    %39 = arith.addf %37, %38 : vector<8x64xf32>
    %cst_27 = arith.constant 0.000000e+00 : f32
    %40 = vector.broadcast %cst_27 : f32 to vector<8x64xf32>
    %41 = arith.maximumf %39, %40 : vector<8x64xf32>
    %42 = vector.broadcast %3 : vector<1x128xf32> to vector<8x128xf32>
    %43 = arith.mulf %42, %36 : vector<8x128xf32>
    %cst_28 = arith.constant dense<0.000000e+00> : vector<8x128xf32>
    %44 = tpu.matmul %41, %4, %cst_28 {dimension_numbers = #tpu.dot_dimension_numbers<[1], [0], [0], [1], [0, 0, 1, 1], [], []>} : vector<8x64xf32>, vector<64x128xf32>, vector<8x128xf32> -> vector<8x128xf32>
    %45 = arith.addf %43, %44 : vector<8x128xf32>
    %46 = vector.broadcast %6 : vector<1x128xf32> to vector<8x128xf32>
    %47 = arith.addf %45, %46 : vector<8x128xf32>
    %c0_29 = arith.constant 0 : index
    %c0_30 = arith.constant 0 : index
    %c0_31 = arith.constant 0 : index
    %48 = vector.load %arg9[%c0_29, %c0_30, %c0_31] : memref<8x8x128xf32, #tpu.memory_space<vmem>>, vector<1x8x128xf32>
    %49 = vector.shape_cast %48 : vector<1x8x128xf32> to vector<8x128xf32>
    %50 = vector.shape_cast %47 : vector<8x128xf32> to vector<1x8x128xf32>
    tpu.vector_store %arg9[%c0_29, %c0_30, %c0_31], %50 {strides = array<i32>} : memref<8x8x128xf32, #tpu.memory_space<vmem>>, vector<1x8x128xf32>,
    %51 = vector.extract_strided_slice %20 {offsets = [1, 0, 0], sizes = [1, 8, 128], strides = [1, 1, 1]} : vector<8x8x128xf32> to vector<1x8x128xf32>
    %52 = vector.shape_cast %51 : vector<1x8x128xf32> to vector<8x128xf32>
    %cst_32 = arith.constant 5.000000e-01 : f32
    %53 = vector.broadcast %cst_32 : f32 to vector<8x128xf32>
    %54 = arith.cmpf ogt, %52, %53 : vector<8x128xf32>
    %55 = vector.extract_strided_slice %18 {offsets = [1, 0, 0], sizes = [1, 8, 128], strides = [1, 1, 1]} : vector<8x8x128xf32> to vector<1x8x128xf32>
    %56 = vector.shape_cast %55 : vector<1x8x128xf32> to vector<8x128xf32>
    %cst_33 = arith.constant 1.250000e-01 : f32
    %57 = vector.broadcast %cst_33 : f32 to vector<8x128xf32>
    %58 = arith.mulf %57, %56 : vector<8x128xf32>
    %cst_34 = arith.constant 1.000000e+00 : f32
    %cst_35 = arith.constant 1.250000e-01 : f32
    %59 = arith.subf %cst_34, %cst_35 : f32
    %60 = vector.broadcast %59 : f32 to vector<8x128xf32>
    %61 = arith.mulf %60, %47 : vector<8x128xf32>
    %62 = arith.addf %58, %61 : vector<8x128xf32>
    %63 = arith.select %54, %62, %47 : vector<8x128xi1>, vector<8x128xf32>
    %cst_36 = arith.constant dense<0.000000e+00> : vector<8x64xf32>
    %64 = tpu.matmul %63, %5, %cst_36 {dimension_numbers = #tpu.dot_dimension_numbers<[1], [0], [0], [1], [0, 0, 1, 1], [], []>} : vector<8x128xf32>, vector<128x64xf32>, vector<8x64xf32> -> vector<8x64xf32>
    %65 = vector.broadcast %7 : vector<1x64xf32> to vector<8x64xf32>
    %66 = arith.addf %64, %65 : vector<8x64xf32>
    %cst_37 = arith.constant 0.000000e+00 : f32
    %67 = vector.broadcast %cst_37 : f32 to vector<8x64xf32>
    %68 = arith.maximumf %66, %67 : vector<8x64xf32>
    %69 = vector.broadcast %3 : vector<1x128xf32> to vector<8x128xf32>
    %70 = arith.mulf %69, %63 : vector<8x128xf32>
    %cst_38 = arith.constant dense<0.000000e+00> : vector<8x128xf32>
    %71 = tpu.matmul %68, %4, %cst_38 {dimension_numbers = #tpu.dot_dimension_numbers<[1], [0], [0], [1], [0, 0, 1, 1], [], []>} : vector<8x64xf32>, vector<64x128xf32>, vector<8x128xf32> -> vector<8x128xf32>
    %72 = arith.addf %70, %71 : vector<8x128xf32>
    %73 = vector.broadcast %6 : vector<1x128xf32> to vector<8x128xf32>
    %74 = arith.addf %72, %73 : vector<8x128xf32>
    %c1 = arith.constant 1 : index
    %c0_39 = arith.constant 0 : index
    %c0_40 = arith.constant 0 : index
    %75 = vector.load %arg9[%c1, %c0_39, %c0_40] : memref<8x8x128xf32, #tpu.memory_space<vmem>>, vector<1x8x128xf32>
    %76 = vector.shape_cast %75 : vector<1x8x128xf32> to vector<8x128xf32>
    %77 = vector.shape_cast %74 : vector<8x128xf32> to vector<1x8x128xf32>
    tpu.vector_store %arg9[%c1, %c0_39, %c0_40], %77 {strides = array<i32>} : memref<8x8x128xf32, #tpu.memory_space<vmem>>, vector<1x8x128xf32>,
    %78 = vector.extract_strided_slice %20 {offsets = [2, 0, 0], sizes = [1, 8, 128], strides = [1, 1, 1]} : vector<8x8x128xf32> to vector<1x8x128xf32>
    %79 = vector.shape_cast %78 : vector<1x8x128xf32> to vector<8x128xf32>
    %cst_41 = arith.constant 5.000000e-01 : f32
    %80 = vector.broadcast %cst_41 : f32 to vector<8x128xf32>
    %81 = arith.cmpf ogt, %79, %80 : vector<8x128xf32>
    %82 = vector.extract_strided_slice %18 {offsets = [2, 0, 0], sizes = [1, 8, 128], strides = [1, 1, 1]} : vector<8x8x128xf32> to vector<1x8x128xf32>
    %83 = vector.shape_cast %82 : vector<1x8x128xf32> to vector<8x128xf32>
    %cst_42 = arith.constant 1.250000e-01 : f32
    %84 = vector.broadcast %cst_42 : f32 to vector<8x128xf32>
    %85 = arith.mulf %84, %83 : vector<8x128xf32>
    %cst_43 = arith.constant 1.000000e+00 : f32
    %cst_44 = arith.constant 1.250000e-01 : f32
    %86 = arith.subf %cst_43, %cst_44 : f32
    %87 = vector.broadcast %86 : f32 to vector<8x128xf32>
    %88 = arith.mulf %87, %74 : vector<8x128xf32>
    %89 = arith.addf %85, %88 : vector<8x128xf32>
    %90 = arith.select %81, %89, %74 : vector<8x128xi1>, vector<8x128xf32>
    %cst_45 = arith.constant dense<0.000000e+00> : vector<8x64xf32>
    %91 = tpu.matmul %90, %5, %cst_45 {dimension_numbers = #tpu.dot_dimension_numbers<[1], [0], [0], [1], [0, 0, 1, 1], [], []>} : vector<8x128xf32>, vector<128x64xf32>, vector<8x64xf32> -> vector<8x64xf32>
    %92 = vector.broadcast %7 : vector<1x64xf32> to vector<8x64xf32>
    %93 = arith.addf %91, %92 : vector<8x64xf32>
    %cst_46 = arith.constant 0.000000e+00 : f32
    %94 = vector.broadcast %cst_46 : f32 to vector<8x64xf32>
    %95 = arith.maximumf %93, %94 : vector<8x64xf32>
    %96 = vector.broadcast %3 : vector<1x128xf32> to vector<8x128xf32>
    %97 = arith.mulf %96, %90 : vector<8x128xf32>
    %cst_47 = arith.constant dense<0.000000e+00> : vector<8x128xf32>
    %98 = tpu.matmul %95, %4, %cst_47 {dimension_numbers = #tpu.dot_dimension_numbers<[1], [0], [0], [1], [0, 0, 1, 1], [], []>} : vector<8x64xf32>, vector<64x128xf32>, vector<8x128xf32> -> vector<8x128xf32>
    %99 = arith.addf %97, %98 : vector<8x128xf32>
    %100 = vector.broadcast %6 : vector<1x128xf32> to vector<8x128xf32>
    %101 = arith.addf %99, %100 : vector<8x128xf32>
    %c2 = arith.constant 2 : index
    %c0_48 = arith.constant 0 : index
    %c0_49 = arith.constant 0 : index
    %102 = vector.load %arg9[%c2, %c0_48, %c0_49] : memref<8x8x128xf32, #tpu.memory_space<vmem>>, vector<1x8x128xf32>
    %103 = vector.shape_cast %102 : vector<1x8x128xf32> to vector<8x128xf32>
    %104 = vector.shape_cast %101 : vector<8x128xf32> to vector<1x8x128xf32>
    tpu.vector_store %arg9[%c2, %c0_48, %c0_49], %104 {strides = array<i32>} : memref<8x8x128xf32, #tpu.memory_space<vmem>>, vector<1x8x128xf32>,
    %105 = vector.extract_strided_slice %20 {offsets = [3, 0, 0], sizes = [1, 8, 128], strides = [1, 1, 1]} : vector<8x8x128xf32> to vector<1x8x128xf32>
    %106 = vector.shape_cast %105 : vector<1x8x128xf32> to vector<8x128xf32>
    %cst_50 = arith.constant 5.000000e-01 : f32
    %107 = vector.broadcast %cst_50 : f32 to vector<8x128xf32>
    %108 = arith.cmpf ogt, %106, %107 : vector<8x128xf32>
    %109 = vector.extract_strided_slice %18 {offsets = [3, 0, 0], sizes = [1, 8, 128], strides = [1, 1, 1]} : vector<8x8x128xf32> to vector<1x8x128xf32>
    %110 = vector.shape_cast %109 : vector<1x8x128xf32> to vector<8x128xf32>
    %cst_51 = arith.constant 1.250000e-01 : f32
    %111 = vector.broadcast %cst_51 : f32 to vector<8x128xf32>
    %112 = arith.mulf %111, %110 : vector<8x128xf32>
    %cst_52 = arith.constant 1.000000e+00 : f32
    %cst_53 = arith.constant 1.250000e-01 : f32
    %113 = arith.subf %cst_52, %cst_53 : f32
    %114 = vector.broadcast %113 : f32 to vector<8x128xf32>
    %115 = arith.mulf %114, %101 : vector<8x128xf32>
    %116 = arith.addf %112, %115 : vector<8x128xf32>
    %117 = arith.select %108, %116, %101 : vector<8x128xi1>, vector<8x128xf32>
    %cst_54 = arith.constant dense<0.000000e+00> : vector<8x64xf32>
    %118 = tpu.matmul %117, %5, %cst_54 {dimension_numbers = #tpu.dot_dimension_numbers<[1], [0], [0], [1], [0, 0, 1, 1], [], []>} : vector<8x128xf32>, vector<128x64xf32>, vector<8x64xf32> -> vector<8x64xf32>
    %119 = vector.broadcast %7 : vector<1x64xf32> to vector<8x64xf32>
    %120 = arith.addf %118, %119 : vector<8x64xf32>
    %cst_55 = arith.constant 0.000000e+00 : f32
    %121 = vector.broadcast %cst_55 : f32 to vector<8x64xf32>
    %122 = arith.maximumf %120, %121 : vector<8x64xf32>
    %123 = vector.broadcast %3 : vector<1x128xf32> to vector<8x128xf32>
    %124 = arith.mulf %123, %117 : vector<8x128xf32>
    %cst_56 = arith.constant dense<0.000000e+00> : vector<8x128xf32>
    %125 = tpu.matmul %122, %4, %cst_56 {dimension_numbers = #tpu.dot_dimension_numbers<[1], [0], [0], [1], [0, 0, 1, 1], [], []>} : vector<8x64xf32>, vector<64x128xf32>, vector<8x128xf32> -> vector<8x128xf32>
    %126 = arith.addf %124, %125 : vector<8x128xf32>
    %127 = vector.broadcast %6 : vector<1x128xf32> to vector<8x128xf32>
    %128 = arith.addf %126, %127 : vector<8x128xf32>
    %c3 = arith.constant 3 : index
    %c0_57 = arith.constant 0 : index
    %c0_58 = arith.constant 0 : index
    %129 = vector.load %arg9[%c3, %c0_57, %c0_58] : memref<8x8x128xf32, #tpu.memory_space<vmem>>, vector<1x8x128xf32>
    %130 = vector.shape_cast %129 : vector<1x8x128xf32> to vector<8x128xf32>
    %131 = vector.shape_cast %128 : vector<8x128xf32> to vector<1x8x128xf32>
    tpu.vector_store %arg9[%c3, %c0_57, %c0_58], %131 {strides = array<i32>} : memref<8x8x128xf32, #tpu.memory_space<vmem>>, vector<1x8x128xf32>,
    %132 = vector.extract_strided_slice %20 {offsets = [4, 0, 0], sizes = [1, 8, 128], strides = [1, 1, 1]} : vector<8x8x128xf32> to vector<1x8x128xf32>
    %133 = vector.shape_cast %132 : vector<1x8x128xf32> to vector<8x128xf32>
    %cst_59 = arith.constant 5.000000e-01 : f32
    %134 = vector.broadcast %cst_59 : f32 to vector<8x128xf32>
    %135 = arith.cmpf ogt, %133, %134 : vector<8x128xf32>
    %136 = vector.extract_strided_slice %18 {offsets = [4, 0, 0], sizes = [1, 8, 128], strides = [1, 1, 1]} : vector<8x8x128xf32> to vector<1x8x128xf32>
    %137 = vector.shape_cast %136 : vector<1x8x128xf32> to vector<8x128xf32>
    %cst_60 = arith.constant 1.250000e-01 : f32
    %138 = vector.broadcast %cst_60 : f32 to vector<8x128xf32>
    %139 = arith.mulf %138, %137 : vector<8x128xf32>
    %cst_61 = arith.constant 1.000000e+00 : f32
    %cst_62 = arith.constant 1.250000e-01 : f32
    %140 = arith.subf %cst_61, %cst_62 : f32
    %141 = vector.broadcast %140 : f32 to vector<8x128xf32>
    %142 = arith.mulf %141, %128 : vector<8x128xf32>
    %143 = arith.addf %139, %142 : vector<8x128xf32>
    %144 = arith.select %135, %143, %128 : vector<8x128xi1>, vector<8x128xf32>
    %cst_63 = arith.constant dense<0.000000e+00> : vector<8x64xf32>
    %145 = tpu.matmul %144, %5, %cst_63 {dimension_numbers = #tpu.dot_dimension_numbers<[1], [0], [0], [1], [0, 0, 1, 1], [], []>} : vector<8x128xf32>, vector<128x64xf32>, vector<8x64xf32> -> vector<8x64xf32>
    %146 = vector.broadcast %7 : vector<1x64xf32> to vector<8x64xf32>
    %147 = arith.addf %145, %146 : vector<8x64xf32>
    %cst_64 = arith.constant 0.000000e+00 : f32
    %148 = vector.broadcast %cst_64 : f32 to vector<8x64xf32>
    %149 = arith.maximumf %147, %148 : vector<8x64xf32>
    %150 = vector.broadcast %3 : vector<1x128xf32> to vector<8x128xf32>
    %151 = arith.mulf %150, %144 : vector<8x128xf32>
    %cst_65 = arith.constant dense<0.000000e+00> : vector<8x128xf32>
    %152 = tpu.matmul %149, %4, %cst_65 {dimension_numbers = #tpu.dot_dimension_numbers<[1], [0], [0], [1], [0, 0, 1, 1], [], []>} : vector<8x64xf32>, vector<64x128xf32>, vector<8x128xf32> -> vector<8x128xf32>
    %153 = arith.addf %151, %152 : vector<8x128xf32>
    %154 = vector.broadcast %6 : vector<1x128xf32> to vector<8x128xf32>
    %155 = arith.addf %153, %154 : vector<8x128xf32>
    %c4 = arith.constant 4 : index
    %c0_66 = arith.constant 0 : index
    %c0_67 = arith.constant 0 : index
    %156 = vector.load %arg9[%c4, %c0_66, %c0_67] : memref<8x8x128xf32, #tpu.memory_space<vmem>>, vector<1x8x128xf32>
    %157 = vector.shape_cast %156 : vector<1x8x128xf32> to vector<8x128xf32>
    %158 = vector.shape_cast %155 : vector<8x128xf32> to vector<1x8x128xf32>
    tpu.vector_store %arg9[%c4, %c0_66, %c0_67], %158 {strides = array<i32>} : memref<8x8x128xf32, #tpu.memory_space<vmem>>, vector<1x8x128xf32>,
    %159 = vector.extract_strided_slice %20 {offsets = [5, 0, 0], sizes = [1, 8, 128], strides = [1, 1, 1]} : vector<8x8x128xf32> to vector<1x8x128xf32>
    %160 = vector.shape_cast %159 : vector<1x8x128xf32> to vector<8x128xf32>
    %cst_68 = arith.constant 5.000000e-01 : f32
    %161 = vector.broadcast %cst_68 : f32 to vector<8x128xf32>
    %162 = arith.cmpf ogt, %160, %161 : vector<8x128xf32>
    %163 = vector.extract_strided_slice %18 {offsets = [5, 0, 0], sizes = [1, 8, 128], strides = [1, 1, 1]} : vector<8x8x128xf32> to vector<1x8x128xf32>
    %164 = vector.shape_cast %163 : vector<1x8x128xf32> to vector<8x128xf32>
    %cst_69 = arith.constant 1.250000e-01 : f32
    %165 = vector.broadcast %cst_69 : f32 to vector<8x128xf32>
    %166 = arith.mulf %165, %164 : vector<8x128xf32>
    %cst_70 = arith.constant 1.000000e+00 : f32
    %cst_71 = arith.constant 1.250000e-01 : f32
    %167 = arith.subf %cst_70, %cst_71 : f32
    %168 = vector.broadcast %167 : f32 to vector<8x128xf32>
    %169 = arith.mulf %168, %155 : vector<8x128xf32>
    %170 = arith.addf %166, %169 : vector<8x128xf32>
    %171 = arith.select %162, %170, %155 : vector<8x128xi1>, vector<8x128xf32>
    %cst_72 = arith.constant dense<0.000000e+00> : vector<8x64xf32>
    %172 = tpu.matmul %171, %5, %cst_72 {dimension_numbers = #tpu.dot_dimension_numbers<[1], [0], [0], [1], [0, 0, 1, 1], [], []>} : vector<8x128xf32>, vector<128x64xf32>, vector<8x64xf32> -> vector<8x64xf32>
    %173 = vector.broadcast %7 : vector<1x64xf32> to vector<8x64xf32>
    %174 = arith.addf %172, %173 : vector<8x64xf32>
    %cst_73 = arith.constant 0.000000e+00 : f32
    %175 = vector.broadcast %cst_73 : f32 to vector<8x64xf32>
    %176 = arith.maximumf %174, %175 : vector<8x64xf32>
    %177 = vector.broadcast %3 : vector<1x128xf32> to vector<8x128xf32>
    %178 = arith.mulf %177, %171 : vector<8x128xf32>
    %cst_74 = arith.constant dense<0.000000e+00> : vector<8x128xf32>
    %179 = tpu.matmul %176, %4, %cst_74 {dimension_numbers = #tpu.dot_dimension_numbers<[1], [0], [0], [1], [0, 0, 1, 1], [], []>} : vector<8x64xf32>, vector<64x128xf32>, vector<8x128xf32> -> vector<8x128xf32>
    %180 = arith.addf %178, %179 : vector<8x128xf32>
    %181 = vector.broadcast %6 : vector<1x128xf32> to vector<8x128xf32>
    %182 = arith.addf %180, %181 : vector<8x128xf32>
    %c5 = arith.constant 5 : index
    %c0_75 = arith.constant 0 : index
    %c0_76 = arith.constant 0 : index
    %183 = vector.load %arg9[%c5, %c0_75, %c0_76] : memref<8x8x128xf32, #tpu.memory_space<vmem>>, vector<1x8x128xf32>
    %184 = vector.shape_cast %183 : vector<1x8x128xf32> to vector<8x128xf32>
    %185 = vector.shape_cast %182 : vector<8x128xf32> to vector<1x8x128xf32>
    tpu.vector_store %arg9[%c5, %c0_75, %c0_76], %185 {strides = array<i32>} : memref<8x8x128xf32, #tpu.memory_space<vmem>>, vector<1x8x128xf32>,
    %186 = vector.extract_strided_slice %20 {offsets = [6, 0, 0], sizes = [1, 8, 128], strides = [1, 1, 1]} : vector<8x8x128xf32> to vector<1x8x128xf32>
    %187 = vector.shape_cast %186 : vector<1x8x128xf32> to vector<8x128xf32>
    %cst_77 = arith.constant 5.000000e-01 : f32
    %188 = vector.broadcast %cst_77 : f32 to vector<8x128xf32>
    %189 = arith.cmpf ogt, %187, %188 : vector<8x128xf32>
    %190 = vector.extract_strided_slice %18 {offsets = [6, 0, 0], sizes = [1, 8, 128], strides = [1, 1, 1]} : vector<8x8x128xf32> to vector<1x8x128xf32>
    %191 = vector.shape_cast %190 : vector<1x8x128xf32> to vector<8x128xf32>
    %cst_78 = arith.constant 1.250000e-01 : f32
    %192 = vector.broadcast %cst_78 : f32 to vector<8x128xf32>
    %193 = arith.mulf %192, %191 : vector<8x128xf32>
    %cst_79 = arith.constant 1.000000e+00 : f32
    %cst_80 = arith.constant 1.250000e-01 : f32
    %194 = arith.subf %cst_79, %cst_80 : f32
    %195 = vector.broadcast %194 : f32 to vector<8x128xf32>
    %196 = arith.mulf %195, %182 : vector<8x128xf32>
    %197 = arith.addf %193, %196 : vector<8x128xf32>
    %198 = arith.select %189, %197, %182 : vector<8x128xi1>, vector<8x128xf32>
    %cst_81 = arith.constant dense<0.000000e+00> : vector<8x64xf32>
    %199 = tpu.matmul %198, %5, %cst_81 {dimension_numbers = #tpu.dot_dimension_numbers<[1], [0], [0], [1], [0, 0, 1, 1], [], []>} : vector<8x128xf32>, vector<128x64xf32>, vector<8x64xf32> -> vector<8x64xf32>
    %200 = vector.broadcast %7 : vector<1x64xf32> to vector<8x64xf32>
    %201 = arith.addf %199, %200 : vector<8x64xf32>
    %cst_82 = arith.constant 0.000000e+00 : f32
    %202 = vector.broadcast %cst_82 : f32 to vector<8x64xf32>
    %203 = arith.maximumf %201, %202 : vector<8x64xf32>
    %204 = vector.broadcast %3 : vector<1x128xf32> to vector<8x128xf32>
    %205 = arith.mulf %204, %198 : vector<8x128xf32>
    %cst_83 = arith.constant dense<0.000000e+00> : vector<8x128xf32>
    %206 = tpu.matmul %203, %4, %cst_83 {dimension_numbers = #tpu.dot_dimension_numbers<[1], [0], [0], [1], [0, 0, 1, 1], [], []>} : vector<8x64xf32>, vector<64x128xf32>, vector<8x128xf32> -> vector<8x128xf32>
    %207 = arith.addf %205, %206 : vector<8x128xf32>
    %208 = vector.broadcast %6 : vector<1x128xf32> to vector<8x128xf32>
    %209 = arith.addf %207, %208 : vector<8x128xf32>
    %c6 = arith.constant 6 : index
    %c0_84 = arith.constant 0 : index
    %c0_85 = arith.constant 0 : index
    %210 = vector.load %arg9[%c6, %c0_84, %c0_85] : memref<8x8x128xf32, #tpu.memory_space<vmem>>, vector<1x8x128xf32>
    %211 = vector.shape_cast %210 : vector<1x8x128xf32> to vector<8x128xf32>
    %212 = vector.shape_cast %209 : vector<8x128xf32> to vector<1x8x128xf32>
    tpu.vector_store %arg9[%c6, %c0_84, %c0_85], %212 {strides = array<i32>} : memref<8x8x128xf32, #tpu.memory_space<vmem>>, vector<1x8x128xf32>,
    %213 = vector.extract_strided_slice %20 {offsets = [7, 0, 0], sizes = [1, 8, 128], strides = [1, 1, 1]} : vector<8x8x128xf32> to vector<1x8x128xf32>
    %214 = vector.shape_cast %213 : vector<1x8x128xf32> to vector<8x128xf32>
    %cst_86 = arith.constant 5.000000e-01 : f32
    %215 = vector.broadcast %cst_86 : f32 to vector<8x128xf32>
    %216 = arith.cmpf ogt, %214, %215 : vector<8x128xf32>
    %217 = vector.extract_strided_slice %18 {offsets = [7, 0, 0], sizes = [1, 8, 128], strides = [1, 1, 1]} : vector<8x8x128xf32> to vector<1x8x128xf32>
    %218 = vector.shape_cast %217 : vector<1x8x128xf32> to vector<8x128xf32>
    %cst_87 = arith.constant 1.250000e-01 : f32
    %219 = vector.broadcast %cst_87 : f32 to vector<8x128xf32>
    %220 = arith.mulf %219, %218 : vector<8x128xf32>
    %cst_88 = arith.constant 1.000000e+00 : f32
    %cst_89 = arith.constant 1.250000e-01 : f32
    %221 = arith.subf %cst_88, %cst_89 : f32
    %222 = vector.broadcast %221 : f32 to vector<8x128xf32>
    %223 = arith.mulf %222, %209 : vector<8x128xf32>
    %224 = arith.addf %220, %223 : vector<8x128xf32>
    %225 = arith.select %216, %224, %209 : vector<8x128xi1>, vector<8x128xf32>
    %cst_90 = arith.constant dense<0.000000e+00> : vector<8x64xf32>
    %226 = tpu.matmul %225, %5, %cst_90 {dimension_numbers = #tpu.dot_dimension_numbers<[1], [0], [0], [1], [0, 0, 1, 1], [], []>} : vector<8x128xf32>, vector<128x64xf32>, vector<8x64xf32> -> vector<8x64xf32>
    %227 = vector.broadcast %7 : vector<1x64xf32> to vector<8x64xf32>
    %228 = arith.addf %226, %227 : vector<8x64xf32>
    %cst_91 = arith.constant 0.000000e+00 : f32
    %229 = vector.broadcast %cst_91 : f32 to vector<8x64xf32>
    %230 = arith.maximumf %228, %229 : vector<8x64xf32>
    %231 = vector.broadcast %3 : vector<1x128xf32> to vector<8x128xf32>
    %232 = arith.mulf %231, %225 : vector<8x128xf32>
    %cst_92 = arith.constant dense<0.000000e+00> : vector<8x128xf32>
    %233 = tpu.matmul %230, %4, %cst_92 {dimension_numbers = #tpu.dot_dimension_numbers<[1], [0], [0], [1], [0, 0, 1, 1], [], []>} : vector<8x64xf32>, vector<64x128xf32>, vector<8x128xf32> -> vector<8x128xf32>
    %234 = arith.addf %232, %233 : vector<8x128xf32>
    %235 = vector.broadcast %6 : vector<1x128xf32> to vector<8x128xf32>
    %236 = arith.addf %234, %235 : vector<8x128xf32>
    %c7 = arith.constant 7 : index
    %c0_93 = arith.constant 0 : index
    %c0_94 = arith.constant 0 : index
    %237 = vector.load %arg9[%c7, %c0_93, %c0_94] : memref<8x8x128xf32, #tpu.memory_space<vmem>>, vector<1x8x128xf32>
    %238 = vector.shape_cast %237 : vector<1x8x128xf32> to vector<8x128xf32>
    %239 = vector.shape_cast %236 : vector<8x128xf32> to vector<1x8x128xf32>
    tpu.vector_store %arg9[%c7, %c0_93, %c0_94], %239 {strides = array<i32>} : memref<8x8x128xf32, #tpu.memory_space<vmem>>, vector<1x8x128xf32>,
    %c0_95 = arith.constant 0 : index
    %c0_96 = arith.constant 0 : index
    %240 = vector.load %arg10[%c0_95, %c0_96] : memref<8x128xf32, #tpu.memory_space<vmem>>, vector<8x128xf32>
    tpu.vector_store %arg10[%c0_95, %c0_96], %236 {strides = array<i32>} : memref<8x128xf32, #tpu.memory_space<vmem>>, vector<8x128xf32>,
    return
  }
  func.func @transform_0(%arg0: i32, %arg1: i32) -> (i32, i32, i32) {
    %c0_i32 = arith.constant 0 : i32
    %c0_i32_0 = arith.constant 0 : i32
    return %arg1, %arg0, %c0_i32 : i32, i32, i32
  }
  func.func @transform_1(%arg0: i32, %arg1: i32) -> (i32, i32) {
    %c0_i32 = arith.constant 0 : i32
    %c0_i32_0 = arith.constant 0 : i32
    %c0_i32_1 = arith.constant 0 : i32
    return %c0_i32, %c0_i32_0 : i32, i32
  }
  func.func @transform_2(%arg0: i32, %arg1: i32) -> (i32, i32) {
    %c0_i32 = arith.constant 0 : i32
    %c0_i32_0 = arith.constant 0 : i32
    %c0_i32_1 = arith.constant 0 : i32
    return %c0_i32, %c0_i32_0 : i32, i32
  }
  func.func @transform_3(%arg0: i32, %arg1: i32) -> (i32, i32) {
    %c0_i32 = arith.constant 0 : i32
    %c0_i32_0 = arith.constant 0 : i32
    %c0_i32_1 = arith.constant 0 : i32
    return %c0_i32, %c0_i32_0 : i32, i32
  }
  func.func @transform_4(%arg0: i32, %arg1: i32) -> (i32, i32) {
    %c0_i32 = arith.constant 0 : i32
    %c0_i32_0 = arith.constant 0 : i32
    %c0_i32_1 = arith.constant 0 : i32
    return %c0_i32, %c0_i32_0 : i32, i32
  }
  func.func @transform_5(%arg0: i32, %arg1: i32) -> (i32, i32) {
    %c0_i32 = arith.constant 0 : i32
    %c0_i32_0 = arith.constant 0 : i32
    %c0_i32_1 = arith.constant 0 : i32
    return %c0_i32, %c0_i32_0 : i32, i32
  }
  func.func @transform_6(%arg0: i32, %arg1: i32) -> (i32, i32) {
    %c0_i32 = arith.constant 0 : i32
    %c0_i32_0 = arith.constant 0 : i32
    %c0_i32_1 = arith.constant 0 : i32
    return %c0_i32, %c0_i32_0 : i32, i32
  }
  func.func @transform_7(%arg0: i32, %arg1: i32) -> (i32, i32, i32) {
    %c0_i32 = arith.constant 0 : i32
    %c0_i32_0 = arith.constant 0 : i32
    return %arg1, %arg0, %c0_i32 : i32, i32, i32
  }
}

</mosaic_0001>

<bundles_post_ra>
// kernel: tpu_custom_call.1
= control target key start
LH: loop header
LB: loop body
LE: loop exit
PB: predicated region body
PF: predicated region fallthrough
CT: control target
= control target key end

     0   :  { %vm92_vm0 = vcmask 64512   ;;  %v746_v4 = vmov 1.0   ;;  %s1265_s0 = inlined_call_operand.vmem [shape: f32[8,8,8], index: 0, kind: input, shape index: {}]   ;;  %s1266_s1 = inlined_call_operand.vmem [shape: f32[8,128], index: 1, kind: input, shape index: {}]   ;;  %s1267_s2 = inlined_call_operand.vmem [shape: f32[1,128], index: 2, kind: input, shape index: {}]   ;;  %s1268_s3 = inlined_call_operand.vmem [shape: f32[64,128], index: 3, kind: input, shape index: {}]   ;;  %s1269_s4 = inlined_call_operand.vmem [shape: f32[128,64], index: 4, kind: input, shape index: {}]   ;;  %s1270_s5 = inlined_call_operand.vmem [shape: f32[1,128], index: 5, kind: input, shape index: {}]   ;;  %s1271_s6 = inlined_call_operand.vmem [shape: f32[1,64], index: 6, kind: input, shape index: {}]   ;;  %s1272_s7 = inlined_call_operand.hbm [shape: f32[8,8,128], index: 7, kind: output, shape index: {}]  }
   0x1   :  { %v59_v0 = vld [vmem:[%s1266_s1] sm:$0xff]  ;;  %v799_v2 = vld [vmem:[%s1269_s4 + $0x78] sm:$0xff]  ;;  %v804_v3 = vld [vmem:[%s1269_s4 + $0x70] sm:$0xff] }
   0x2   :  { %v60_v1 = vld [vmem:[%s1265_s0] sm:$0xff]  ;;  %197 = vmatpush.msra.mxu1 %v59_v0  ;;  %132 = vmatpush.msra.mxu0 %v59_v0  ;;  %v814_v7 = vld [vmem:[%s1269_s4 + $0x68] sm:$0xff] }
   0x3   :  { %vm68_vm1 = vcmp.ne.f32.partialorder %v60_v1, %v60_v1  ;;  %236 = vmatpush.msra.mxu2 %v799_v2  ;;  %v821_v8 = vld [vmem:[%s1269_s4 + $0x60] sm:$0xff] }
   0x4   :  { %v84_v5 = vsel %vm68_vm1, 0.0, %v746_v4  ;;  %v76_v6 = vsel %vm68_vm1, 0.0, %v60_v1  ;;  %350 = vmatpush.msrb.mxu0 %v799_v2  ;;  %404 = vmatpush.msrb.mxu1 %v799_v2 }
   0x5   :  { %696 = vmatmul.msk.f32.vlgmr.msra.gmra.mxu1 %vm92_vm0, %v84_v5  ;;  %688 = vmatmul.msk.f32.vlgmr.msra.gmra.mxu0 %vm92_vm0, %v76_v6 }
   0x6   :  { %237 = vmatpush.msra.mxu2 %v804_v3  ;;  %351 = vmatpush.msrb.mxu0 %v804_v3 }
   0x8   :  { %238 = vmatpush.msra.mxu2 %v814_v7  ;;  %352 = vmatpush.msrb.mxu0 %v814_v7 }
   0x9   :  { %12 = vsyncpa [#allocation4], 0  ;;  %v829_v9 = vld [vmem:[%s1269_s4 + $0x58] sm:$0xff]  ;;  %405 = vmatpush.msrb.mxu1 %v804_v3  ;;  %v837_v10 = vld [vmem:[%s1269_s4 + $0x50] sm:$0xff]  ;;  %vm261_vm4 = vcmask 523264   ;;  %s676_s21 = sshll.u32 %s1272_s7, 4  ;;  %s677_s21 = int_to_ptr.hbm [resolvable:$true] %s676_s21 }
   0xa   :  { %239 = vmatpush.msra.mxu2 %v821_v8  ;;  %353 = vmatpush.msrb.mxu0 %v821_v8  ;;  %v845_v11 = vld [vmem:[%s1269_s4 + $0x48] sm:$0xff]  ;;  %v853_v12 = vld [vmem:[%s1269_s4 + $0x40] sm:$0xff]  ;;  %v861_v13 = vld [vmem:[%s1269_s4 + $0x38] sm:$0xff]  ;;  %s748_s22 = smov 128   ;;  %s749_s23 = smov 8  }
   0xb   :  { %406 = vmatpush.msrb.mxu1 %v814_v7  ;;  %v869_v14 = vld [vmem:[%s1269_s4 + $0x30] sm:$0xff]  ;;  %v877_v15 = vld [vmem:[%s1269_s4 + $0x28] sm:$0xff]  ;;  %v885_v16 = vld [vmem:[%s1269_s4 + $0x20] sm:$0xff] }
   0xc   :  { %240 = vmatpush.msra.mxu2 %v829_v9  ;;  %354 = vmatpush.msrb.mxu0 %v829_v9  ;;  %v893_v17 = vld [vmem:[%s1269_s4 + $0x18] sm:$0xff]  ;;  %v901_v18 = vld [vmem:[%s1269_s4 + $0x10] sm:$0xff]  ;;  %v909_v19 = vld [vmem:[%s1269_s4 + $0x8] sm:$0xff] }
   0xd   :  { %407 = vmatpush.msrb.mxu1 %v821_v8  ;;  %v922_v20 = vld [vmem:[%s1269_s4] sm:$0xff]  ;;  %v929_v21 = vld [vmem:[%s1268_s3 + $0x38] sm:$0xff]  ;;  %v934_v22 = vld [vmem:[%s1268_s3 + $0x30] sm:$0xff] }
   0xe   :  { %241 = vmatpush.msra.mxu2 %v837_v10  ;;  %355 = vmatpush.msrb.mxu0 %v837_v10  ;;  %v943_v23 = vld [vmem:[%s1268_s3 + $0x28] sm:$0xff]  ;;  %v952_v24 = vld [vmem:[%s1268_s3 + $0x20] sm:$0xff]  ;;  %v961_v25 = vld [vmem:[%s1268_s3 + $0x18] sm:$0xff] }
   0xf   :  { %408 = vmatpush.msrb.mxu1 %v829_v9  ;;  %273 = vmatpush.msra.mxu3 %v929_v21  ;;  %v991_v28 = vld [vmem:[%s1268_s3 + $0x10] sm:$0xff]  ;;  %v998_v29 = vld [vmem:[%s1268_s3 + $0x8] sm:$0xff]  ;;  %v1006_v30 = vld [vmem:[%s1268_s3] sm:$0xff] }
  0x10   :  { %242 = vmatpush.msra.mxu2 %v845_v11  ;;  %356 = vmatpush.msrb.mxu0 %v845_v11  ;;  %v61_v31 = vld [vmem:[%s1265_s0 + $0x8] sm:$0xff]  ;;  %v1041_v34 = vld [vmem:[%s1271_s6] ss:$0 sm:$0xff]  ;;  %v62_v51 = vld [vmem:[%s1265_s0 + $0x10] sm:$0xff] }
  0x11   :  { %409 = vmatpush.msrb.mxu1 %v837_v10  ;;  %274 = vmatpush.msra.mxu3 %v934_v22  ;;  %vm69_vm3 = vcmp.ne.f32.partialorder %v61_v31, %v61_v31  ;;  %v1060_v38 = vld [vmem:[%s1267_s2] ss:$0 sm:$0xff]  ;;  %vm70_vm6 = vcmp.ne.f32.partialorder %v62_v51, %v62_v51  ;;  %v1086_v54 = vld [vmem:[%s1265_s0 + $0x18] sm:$0xff]  ;;  %v1111_v58 = vld [vmem:[%s1265_s0 + $0x28] sm:$0xff] }
  0x12   :  { %243 = vmatpush.msra.mxu2 %v853_v12  ;;  %357 = vmatpush.msrb.mxu0 %v853_v12  ;;  %v77_v32 = vsel %vm69_vm3, 0.0, %v61_v31  ;;  %v85_v33 = vsel %vm69_vm3, 0.0, %v746_v4  ;;  %v1068_v41 = vld [vmem:[%s1270_s5] ss:$0 sm:$0xff]  ;;  %v78_v52 = vsel %vm70_vm6, 0.0, %v62_v51  ;;  %v86_v53 = vsel %vm70_vm6, 0.0, %v746_v4 }
  0x13   :  { %410 = vmatpush.msrb.mxu1 %v845_v11  ;;  %275 = vmatpush.msra.mxu3 %v943_v23  ;;  %vm71_vm7 = vcmp.ne.f32.partialorder %v1086_v54, %v1086_v54  ;;  %v1099_v56 = vld [vmem:[%s1265_s0 + $0x20] sm:$0xff]  ;;  %vm73_vm9 = vcmp.ne.f32.partialorder %v1111_v58, %v1111_v58  ;;  %v66_v60 = vld [vmem:[%s1265_s0 + $0x30] sm:$0xff]  ;;  %v67_v1 = vld [vmem:[%s1265_s0 + $0x38] sm:$0xff]  ;;  %s747_s0 = smov [#allocation3]  }
  0x14   :  { %244 = vmatpush.msra.mxu2 %v861_v13  ;;  %358 = vmatpush.msrb.mxu0 %v861_v13  ;;  %v79_v55 = vsel %vm71_vm7, 0.0, %v1086_v54  ;;  %vm72_vm8 = vcmp.ne.f32.partialorder %v1099_v56, %v1099_v56  ;;  %v81_v59 = vsel %vm73_vm9, 0.0, %v1111_v58  ;;  %vm74_vm10 = vcmp.ne.f32.partialorder %v66_v60, %v66_v60  ;;  %s674_s18 = sshll.u32 %s747_s0, 4  ;;  %s675_s18 = int_to_ptr.vmem [resolvable:$true] %s674_s18 }
  0x15   :  { %411 = vmatpush.msrb.mxu1 %v853_v12  ;;  %276 = vmatpush.msra.mxu3 %v952_v24  ;;  %v80_v57 = vsel %vm72_vm8, 0.0, %v1099_v56  ;;  %v82_v0 = vsel %vm74_vm10, 0.0, %v66_v60  ;;  %vm75_vm11 = vcmp.ne.f32.partialorder %v67_v1, %v67_v1 }
  0x16   :  { %245 = vmatpush.msra.mxu2 %v869_v14  ;;  %359 = vmatpush.msrb.mxu0 %v869_v14  ;;  %v83_v5 = vsel %vm75_vm11, 0.0, %v67_v1 }
  0x17   :  { %412 = vmatpush.msrb.mxu1 %v861_v13  ;;  %277 = vmatpush.msra.mxu3 %v961_v25 }
  0x18   :  { %246 = vmatpush.msra.mxu2 %v877_v15  ;;  %360 = vmatpush.msrb.mxu0 %v877_v15 }
  0x19   :  { %413 = vmatpush.msrb.mxu1 %v869_v14  ;;  %278 = vmatpush.msra.mxu3 %v991_v28 }
  0x1a   :  { %247 = vmatpush.msra.mxu2 %v885_v16  ;;  %361 = vmatpush.msrb.mxu0 %v885_v16 }
  0x1b   :  { %414 = vmatpush.msrb.mxu1 %v877_v15  ;;  %279 = vmatpush.msra.mxu3 %v998_v29 }
  0x1c   :  { %248 = vmatpush.msra.mxu2 %v893_v17  ;;  %362 = vmatpush.msrb.mxu0 %v893_v17 }
  0x1d   :  { %415 = vmatpush.msrb.mxu1 %v885_v16  ;;  %280 = vmatpush.msra.mxu3 %v1006_v30 }
  0x1e   :  { %249 = vmatpush.msra.mxu2 %v901_v18  ;;  %363 = vmatpush.msrb.mxu0 %v901_v18 }
  0x1f   :  { %416 = vmatpush.msrb.mxu1 %v893_v17  ;;  %296 = vmatpush.msrb.mxu3 %v799_v2 }
  0x20   :  { %250 = vmatpush.msra.mxu2 %v909_v19  ;;  %364 = vmatpush.msrb.mxu0 %v909_v19 }
  0x21   :  { %417 = vmatpush.msrb.mxu1 %v901_v18  ;;  %297 = vmatpush.msrb.mxu3 %v804_v3 }
  0x22   :  { %251 = vmatpush.msra.mxu2 %v922_v20  ;;  %365 = vmatpush.msrb.mxu0 %v922_v20 }
  0x23   :  { %418 = vmatpush.msrb.mxu1 %v909_v19  ;;  %689 = vmatmul.msk.f32.gmra.mxu0 %vm92_vm0, %v77_v32 }
  0x24   :  { %512 = vmatpush.msra.mxu0 %v799_v2  ;;  %329 = vmatpush.msrb.mxu2 %v929_v21 }
  0x25   :  { %419 = vmatpush.msrb.mxu1 %v922_v20  ;;  %298 = vmatpush.msrb.mxu3 %v814_v7 }
  0x26   :  { %513 = vmatpush.msra.mxu0 %v804_v3  ;;  %330 = vmatpush.msrb.mxu2 %v934_v22 }
  0x27   :  { %545 = vmatpush.msra.mxu1 %v929_v21  ;;  %299 = vmatpush.msrb.mxu3 %v821_v8 }
  0x28   :  { %514 = vmatpush.msra.mxu0 %v814_v7  ;;  %331 = vmatpush.msrb.mxu2 %v943_v23 }
  0x29   :  { %546 = vmatpush.msra.mxu1 %v934_v22  ;;  %300 = vmatpush.msrb.mxu3 %v829_v9 }
  0x2a   :  { %515 = vmatpush.msra.mxu0 %v821_v8  ;;  %332 = vmatpush.msrb.mxu2 %v952_v24 }
  0x2b   :  { %547 = vmatpush.msra.mxu1 %v943_v23  ;;  %301 = vmatpush.msrb.mxu3 %v837_v10 }
  0x2c   :  { %516 = vmatpush.msra.mxu0 %v829_v9  ;;  %333 = vmatpush.msrb.mxu2 %v961_v25 }
  0x2d   :  { %548 = vmatpush.msra.mxu1 %v952_v24  ;;  %302 = vmatpush.msrb.mxu3 %v845_v11 }
  0x2e   :  { %517 = vmatpush.msra.mxu0 %v837_v10  ;;  %334 = vmatpush.msrb.mxu2 %v991_v28 }
  0x2f   :  { %549 = vmatpush.msra.mxu1 %v961_v25  ;;  %303 = vmatpush.msrb.mxu3 %v853_v12 }
  0x30   :  { %518 = vmatpush.msra.mxu0 %v845_v11  ;;  %335 = vmatpush.msrb.mxu2 %v998_v29 }
  0x31   :  { %550 = vmatpush.msra.mxu1 %v991_v28  ;;  %304 = vmatpush.msrb.mxu3 %v861_v13 }
  0x32   :  { %519 = vmatpush.msra.mxu0 %v853_v12  ;;  %336 = vmatpush.msrb.mxu2 %v1006_v30 }
  0x33   :  { %551 = vmatpush.msra.mxu1 %v998_v29  ;;  %305 = vmatpush.msrb.mxu3 %v869_v14 }
  0x34   :  { %520 = vmatpush.msra.mxu0 %v861_v13  ;;  %697 = vmatmul.msk.f32.gmra.mxu1 %vm92_vm0, %v85_v33 }
  0x35   :  { %552 = vmatpush.msra.mxu1 %v1006_v30  ;;  %306 = vmatpush.msrb.mxu3 %v877_v15 }
  0x36   :  { %521 = vmatpush.msra.mxu0 %v869_v14 }
  0x37   :  { %307 = vmatpush.msrb.mxu3 %v885_v16  ;;  %690 = vmatmul.msk.f32.gmra.mxu0 %vm92_vm0, %v78_v52 }
  0x38   :  { %522 = vmatpush.msra.mxu0 %v877_v15 }
  0x39   :  { %308 = vmatpush.msrb.mxu3 %v893_v17 }
  0x3a   :  { %523 = vmatpush.msra.mxu0 %v885_v16 }
  0x3b   :  { %309 = vmatpush.msrb.mxu3 %v901_v18 }
  0x3c   :  { %524 = vmatpush.msra.mxu0 %v893_v17  ;;  %698 = vmatmul.msk.f32.gmra.mxu1 %vm92_vm0, %v86_v53  ;;  %v91_v53 = vsel %vm75_vm11, 0.0, %v746_v4 }
  0x3d   :  { %310 = vmatpush.msrb.mxu3 %v909_v19 }
  0x3e   :  { %525 = vmatpush.msra.mxu0 %v901_v18 }
  0x3f   :  { %311 = vmatpush.msrb.mxu3 %v922_v20  ;;  %691 = vmatmul.msk.f32.gmra.mxu0 %vm92_vm0, %v79_v55 }
  0x40   :  { %526 = vmatpush.msra.mxu0 %v909_v19 }
  0x42   :  { %527 = vmatpush.msra.mxu0 %v922_v20 }
  0x47   :  { %692 = vmatmul.msk.f32.gmra.mxu0 %vm92_vm0, %v80_v57 }
  0x4f   :  { %693 = vmatmul.msk.f32.gmra.mxu0 %vm92_vm0, %v81_v59 }
  0x57   :  { %694 = vmatmul.msk.f32.gmra.mxu0 %vm92_vm0, %v82_v0 }
  0x5f   :  { %695 = vmatmul.msk.f32.gmra.mxu0 %vm92_vm0, %v83_v5 }
  0x82   :  { %v982_v26 = vpop.f32.mrf.mxu1  ;;  %v134_v27 = vpop.f32.mrf.mxu0 }
  0x83   :  { %vm225_vm2 = vcmp.gt.f32.partialorder %v982_v26, 0.5 }
  0x84   :  { %712 = vmatmul.msk.f32.vlgmr.msra.gmra.mxu2 %vm225_vm2, %v134_v27  ;;  %v232_v39 = vsel %vm225_vm2, %v134_v27, 0.0 }
  0x85   :  { %383 = vmatpush.msra.mxu2 %v929_v21  ;;  %v260_v40 = vmul.f32 %v1060_v38, %v232_v39 }
  0x87   :  { %384 = vmatpush.msra.mxu2 %v934_v22 }
  0x89   :  { %385 = vmatpush.msra.mxu2 %v943_v23 }
  0x8b   :  { %386 = vmatpush.msra.mxu2 %v952_v24 }
  0x8d   :  { %387 = vmatpush.msra.mxu2 %v961_v25 }
  0x8f   :  { %388 = vmatpush.msra.mxu2 %v991_v28 }
  0x91   :  { %389 = vmatpush.msra.mxu2 %v998_v29 }
  0x93   :  { %390 = vmatpush.msra.mxu2 %v1006_v30 }
  0xa0   :  { %v137_v43 = vpop.f32.mrf.mxu0 }
  0xa1   :  { %v292_v46 = vmul.f32 0.125, %v137_v43 }
  0xb1   :  { %v202_v47 = vpop.f32.mrf.mxu1 }
  0xb2   :  { %vm291_vm5 = vcmp.gt.f32.partialorder %v202_v47, 0.5  ;;  %v89_v47 = vsel %vm73_vm9, 0.0, %v746_v4 }
  0xb4   :  { %v140_v27 = vpop.f32.mrf.mxu0 }
  0xb5   :  { %v346_v33 = vmul.f32 0.125, %v140_v27 }
 0x107   :  { %v253_v35 = vpop.f32.mrf.mxu2 }
 0x108   :  { %v254_v36 = vadd.f32 %v1041_v34, %v253_v35  ;;  %v205_v35 = vpop.f32.mrf.mxu1 }
 0x109   :  { %vm345_vm12 = vcmp.gt.f32.partialorder %v205_v35, 0.5 }
 0x10a   :  { %v256_v37 = vmax.f32 %v254_v36, 0.0 }
 0x10c   :  { %704 = vmatmul.msk.f32.vlgmr.msra.gmra.mxu3 %vm261_vm4, %v256_v37 }
 0x10d   :  { %437 = vmatpush.msra.mxu3 %v929_v21 }
 0x10f   :  { %438 = vmatpush.msra.mxu3 %v934_v22 }
 0x111   :  { %439 = vmatpush.msra.mxu3 %v943_v23 }
 0x113   :  { %440 = vmatpush.msra.mxu3 %v952_v24 }
 0x115   :  { %441 = vmatpush.msra.mxu3 %v961_v25 }
 0x117   :  { %442 = vmatpush.msra.mxu3 %v991_v28 }
 0x119   :  { %443 = vmatpush.msra.mxu3 %v998_v29 }
 0x11b   :  { %444 = vmatpush.msra.mxu3 %v1006_v30 }
 0x18f   :  { %v282_v42 = vpop.f32.mrf.mxu3 }
 0x190   :  { %v285_v44 = vadd.f32 %v282_v42, %v260_v40  ;;  %v143_v40 = vpop.f32.mrf.mxu0 }
 0x191   :  { %v400_v59 = vmul.f32 0.125, %v143_v40 }
 0x192   :  { %v289_v45 = vadd.f32 %v1068_v41, %v285_v44  ;;  %v87_v44 = vsel %vm71_vm7, 0.0, %v746_v4 }
 0x193   :  { %699 = vmatmul.msk.f32.gmra.mxu1 %vm92_vm0, %v87_v44 }
 0x194   :  { %290 = vst [vmem:[#allocation3] sm:$0xff] %v289_v45  ;;  %v293_v48 = vmul.f32 0.875, %v289_v45 }
 0x196   :  { %v294_v49 = vadd.f32 %v293_v48, %v292_v46 }
 0x198   :  { %v295_v50 = vsel %vm291_vm5, %v294_v49, %v289_v45  ;;  %v1159_v42 = vpop.f32.mrf.mxu0  ;;  %v88_v45 = vsel %vm72_vm8, 0.0, %v746_v4  ;;  %v90_v49 = vsel %vm74_vm10, 0.0, %v746_v4 }
 0x199   :  { %312 = vmatmul.f32.vlgmr.msrb.gmra.mxu3 %v295_v50  ;;  %v317_v6 = vmul.f32 %v1060_v38, %v295_v50 }
 0x19a   :  { %491 = vmatpush.msrb.mxu3 %v929_v21 }
 0x19b   :  { %700 = vmatmul.msk.f32.gmra.mxu1 %vm92_vm0, %v88_v45 }
 0x19c   :  { %492 = vmatpush.msrb.mxu3 %v934_v22 }
 0x19e   :  { %493 = vmatpush.msrb.mxu3 %v943_v23 }
 0x1a0   :  { %494 = vmatpush.msrb.mxu3 %v952_v24  ;;  %v1161_v43 = vpop.f32.mrf.mxu0 }
 0x1a2   :  { %495 = vmatpush.msrb.mxu3 %v961_v25 }
 0x1a3   :  { %701 = vmatmul.msk.f32.gmra.mxu1 %vm92_vm0, %v89_v47 }
 0x1a4   :  { %496 = vmatpush.msrb.mxu3 %v991_v28 }
 0x1a6   :  { %497 = vmatpush.msrb.mxu3 %v998_v29 }
 0x1a8   :  { %498 = vmatpush.msrb.mxu3 %v1006_v30  ;;  %v1172_v46 = vpop.f32.mrf.mxu0 }
 0x1ab   :  { %702 = vmatmul.msk.f32.gmra.mxu1 %vm92_vm0, %v90_v49 }
 0x1b0   :  { %v1179_v48 = vpop.f32.mrf.mxu0 }
 0x1b3   :  { %703 = vmatmul.msk.f32.gmra.mxu1 %vm92_vm0, %v91_v53 }
 0x210   :  { %v208_v58 = vpop.f32.mrf.mxu1 }
 0x211   :  { %vm399_vm13 = vcmp.gt.f32.partialorder %v208_v58, 0.5 }
 0x218   :  { %v211_v4 = vpop.f32.mrf.mxu1 }
 0x219   :  { %vm453_vm14 = vcmp.gt.f32.partialorder %v211_v4, 0.5 }
 0x21c   :  { %v313_v61 = vpop.f32.mrf.mxu3 }
 0x21d   :  { %v314_v62 = vadd.f32 %v1041_v34, %v313_v61 }
 0x21f   :  { %v316_v63 = vmax.f32 %v314_v62, 0.0 }
 0x221   :  { %705 = vmatmul.msk.f32.vlgmr.msrb.gmra.mxu2 %vm261_vm4, %v316_v63  ;;  %v214_v63 = vpop.f32.mrf.mxu1 }
 0x222   :  { %458 = vmatpush.msrb.mxu2 %v799_v2  ;;  %vm507_vm15 = vcmp.gt.f32.partialorder %v214_v63, 0.5 }
 0x224   :  { %459 = vmatpush.msrb.mxu2 %v804_v3 }
 0x226   :  { %460 = vmatpush.msrb.mxu2 %v814_v7 }
 0x228   :  { %461 = vmatpush.msrb.mxu2 %v821_v8 }
 0x229   :  { %v1216_v0 = vpop.f32.mrf.mxu1 }
 0x22a   :  { %462 = vmatpush.msrb.mxu2 %v829_v9  ;;  %vm561_vm0 = vcmp.gt.f32.partialorder %v1216_v0, 0.5 }
 0x22c   :  { %463 = vmatpush.msrb.mxu2 %v837_v10 }
 0x22e   :  { %464 = vmatpush.msrb.mxu2 %v845_v11 }
 0x230   :  { %465 = vmatpush.msrb.mxu2 %v853_v12 }
 0x231   :  { %v1218_v1 = vpop.f32.mrf.mxu1 }
 0x232   :  { %466 = vmatpush.msrb.mxu2 %v861_v13  ;;  %vm615_vm1 = vcmp.gt.f32.partialorder %v1218_v1, 0.5 }
 0x234   :  { %467 = vmatpush.msrb.mxu2 %v869_v14 }
 0x236   :  { %468 = vmatpush.msrb.mxu2 %v877_v15 }
 0x238   :  { %469 = vmatpush.msrb.mxu2 %v885_v16 }
 0x23a   :  { %470 = vmatpush.msrb.mxu2 %v893_v17 }
 0x23c   :  { %471 = vmatpush.msrb.mxu2 %v901_v18 }
 0x23e   :  { %472 = vmatpush.msrb.mxu2 %v909_v19 }
 0x240   :  { %473 = vmatpush.msrb.mxu2 %v922_v20 }
 0x2a4   :  { %v338_v26 = vpop.f32.mrf.mxu2 }
 0x2a5   :  { %v341_v31 = vadd.f32 %v338_v26, %v317_v6 }
 0x2a7   :  { %v342_v32 = vadd.f32 %v1068_v41, %v341_v31 }
 0x2a9   :  { %344 = vst [vmem:[#allocation3 + $0x8] sm:$0xff] %v342_v32  ;;  %v347_v36 = vmul.f32 0.875, %v342_v32 }
 0x2ab   :  { %v348_v37 = vadd.f32 %v347_v36, %v346_v33 }
 0x2ad   :  { %v349_v39 = vsel %vm345_vm12, %v348_v37, %v342_v32  ;;  %v562_v32 = vmul.f32 0.125, %v1172_v46  ;;  %v616_v46 = vmul.f32 0.125, %v1179_v48 }
 0x2ae   :  { %366 = vmatmul.f32.vlgmr.msrb.gmra.mxu0 %v349_v39  ;;  %v371_v54 = vmul.f32 %v1060_v38, %v349_v39 }
 0x2af   :  { %653 = vmatpush.msrb.mxu0 %v929_v21 }
 0x2b1   :  { %654 = vmatpush.msrb.mxu0 %v934_v22 }
 0x2b3   :  { %655 = vmatpush.msrb.mxu0 %v943_v23 }
 0x2b5   :  { %656 = vmatpush.msrb.mxu0 %v952_v24 }
 0x2b7   :  { %657 = vmatpush.msrb.mxu0 %v961_v25 }
 0x2b9   :  { %658 = vmatpush.msrb.mxu0 %v991_v28 }
 0x2bb   :  { %659 = vmatpush.msrb.mxu0 %v998_v29 }
 0x2bd   :  { %660 = vmatpush.msrb.mxu0 %v1006_v30 }
 0x32b   :  { %v367_v50 = vpop.f32.mrf.mxu0 }
 0x32c   :  { %v368_v51 = vadd.f32 %v1041_v34, %v367_v50 }
 0x32e   :  { %v370_v52 = vmax.f32 %v368_v51, 0.0 }
 0x330   :  { %706 = vmatmul.msk.f32.vlgmr.msra.gmra.mxu2 %vm261_vm4, %v370_v52 }
 0x331   :  { %620 = vmatpush.msra.mxu2 %v799_v2 }
 0x333   :  { %621 = vmatpush.msra.mxu2 %v804_v3 }
 0x335   :  { %622 = vmatpush.msra.mxu2 %v814_v7 }
 0x337   :  { %623 = vmatpush.msra.mxu2 %v821_v8 }
 0x339   :  { %624 = vmatpush.msra.mxu2 %v829_v9 }
 0x33b   :  { %625 = vmatpush.msra.mxu2 %v837_v10 }
 0x33d   :  { %626 = vmatpush.msra.mxu2 %v845_v11 }
 0x33f   :  { %627 = vmatpush.msra.mxu2 %v853_v12 }
 0x341   :  { %628 = vmatpush.msra.mxu2 %v861_v13 }
 0x343   :  { %629 = vmatpush.msra.mxu2 %v869_v14 }
 0x345   :  { %630 = vmatpush.msra.mxu2 %v877_v15 }
 0x347   :  { %631 = vmatpush.msra.mxu2 %v885_v16 }
 0x349   :  { %632 = vmatpush.msra.mxu2 %v893_v17 }
 0x34b   :  { %633 = vmatpush.msra.mxu2 %v901_v18 }
 0x34d   :  { %634 = vmatpush.msra.mxu2 %v909_v19 }
 0x34f   :  { %635 = vmatpush.msra.mxu2 %v922_v20 }
 0x3b3   :  { %v392_v55 = vpop.f32.mrf.mxu2 }
 0x3b4   :  { %v395_v56 = vadd.f32 %v392_v55, %v371_v54 }
 0x3b6   :  { %v396_v57 = vadd.f32 %v1068_v41, %v395_v56 }
 0x3b8   :  { %398 = vst [vmem:[#allocation3 + $0x10] sm:$0xff] %v396_v57  ;;  %v401_v60 = vmul.f32 0.875, %v396_v57 }
 0x3ba   :  { %v402_v61 = vadd.f32 %v401_v60, %v400_v59 }
 0x3bc   :  { %v403_v62 = vsel %vm399_vm13, %v402_v61, %v396_v57 }
 0x3bd   :  { %420 = vmatmul.f32.vlgmr.msrb.gmra.mxu1 %v403_v62 }
 0x3be   :  { %599 = vmatpush.msrb.mxu1 %v929_v21 }
 0x3c0   :  { %600 = vmatpush.msrb.mxu1 %v934_v22 }
 0x3c2   :  { %601 = vmatpush.msrb.mxu1 %v943_v23 }
 0x3c4   :  { %602 = vmatpush.msrb.mxu1 %v952_v24 }
 0x3c6   :  { %603 = vmatpush.msrb.mxu1 %v961_v25 }
 0x3c8   :  { %604 = vmatpush.msrb.mxu1 %v991_v28 }
 0x3ca   :  { %605 = vmatpush.msrb.mxu1 %v998_v29 }
 0x3cc   :  { %606 = vmatpush.msrb.mxu1 %v1006_v30 }
 0x43a   :  { %v421_v21 = vpop.f32.mrf.mxu1 }
 0x43b   :  { %v422_v22 = vadd.f32 %v1041_v34, %v421_v21 }
 0x43d   :  { %v424_v23 = vmax.f32 %v422_v22, 0.0 }
 0x43f   :  { %707 = vmatmul.msk.f32.vlgmr.msra.gmra.mxu3 %vm261_vm4, %v424_v23 }
 0x440   :  { %566 = vmatpush.msra.mxu3 %v799_v2  ;;  %v425_v2 = vmul.f32 %v1060_v38, %v403_v62 }
 0x442   :  { %567 = vmatpush.msra.mxu3 %v804_v3 }
 0x444   :  { %568 = vmatpush.msra.mxu3 %v814_v7 }
 0x446   :  { %569 = vmatpush.msra.mxu3 %v821_v8 }
 0x448   :  { %570 = vmatpush.msra.mxu3 %v829_v9  ;;  %v454_v9 = vmul.f32 0.125, %v1159_v42 }
 0x44a   :  { %571 = vmatpush.msra.mxu3 %v837_v10 }
 0x44c   :  { %572 = vmatpush.msra.mxu3 %v845_v11 }
 0x44e   :  { %573 = vmatpush.msra.mxu3 %v853_v12 }
 0x450   :  { %574 = vmatpush.msra.mxu3 %v861_v13 }
 0x452   :  { %575 = vmatpush.msra.mxu3 %v869_v14 }
 0x454   :  { %576 = vmatpush.msra.mxu3 %v877_v15 }
 0x456   :  { %577 = vmatpush.msra.mxu3 %v885_v16 }
 0x458   :  { %578 = vmatpush.msra.mxu3 %v893_v17 }
 0x45a   :  { %579 = vmatpush.msra.mxu3 %v901_v18 }
 0x45c   :  { %580 = vmatpush.msra.mxu3 %v909_v19 }
 0x45e   :  { %581 = vmatpush.msra.mxu3 %v922_v20  ;;  %v508_v20 = vmul.f32 0.125, %v1161_v43 }
 0x4c2   :  { %v446_v3 = vpop.f32.mrf.mxu3 }
 0x4c3   :  { %v449_v7 = vadd.f32 %v446_v3, %v425_v2 }
 0x4c5   :  { %v450_v8 = vadd.f32 %v1068_v41, %v449_v7 }
 0x4c7   :  { %452 = vst [vmem:[#allocation3 + $0x18] sm:$0xff] %v450_v8  ;;  %v455_v10 = vmul.f32 0.875, %v450_v8 }
 0x4c9   :  { %v456_v11 = vadd.f32 %v455_v10, %v454_v9 }
 0x4cb   :  { %v457_v12 = vsel %vm453_vm14, %v456_v11, %v450_v8 }
 0x4cc   :  { %474 = vmatmul.f32.vlgmr.msrb.gmra.mxu2 %v457_v12  ;;  %v479_v16 = vmul.f32 %v1060_v38, %v457_v12 }
 0x54f   :  { %v475_v13 = vpop.f32.mrf.mxu2 }
 0x550   :  { %v476_v14 = vadd.f32 %v1041_v34, %v475_v13 }
 0x552   :  { %v478_v15 = vmax.f32 %v476_v14, 0.0 }
 0x554   :  { %708 = vmatmul.msk.f32.vlgmr.msrb.gmra.mxu3 %vm261_vm4, %v478_v15 }
 0x5d7   :  { %v500_v17 = vpop.f32.mrf.mxu3 }
 0x5d8   :  { %v503_v18 = vadd.f32 %v500_v17, %v479_v16 }
 0x5da   :  { %v504_v19 = vadd.f32 %v1068_v41, %v503_v18 }
 0x5dc   :  { %506 = vst [vmem:[#allocation3 + $0x20] sm:$0xff] %v504_v19  ;;  %v509_v24 = vmul.f32 0.875, %v504_v19 }
 0x5de   :  { %v510_v25 = vadd.f32 %v509_v24, %v508_v20 }
 0x5e0   :  { %v511_v28 = vsel %vm507_vm15, %v510_v25, %v504_v19 }
 0x5e1   :  { %528 = vmatmul.f32.vlgmr.msra.gmra.mxu0 %v511_v28  ;;  %v533_v6 = vmul.f32 %v1060_v38, %v511_v28 }
 0x65e   :  { %v529_v29 = vpop.f32.mrf.mxu0 }
 0x65f   :  { %v530_v30 = vadd.f32 %v1041_v34, %v529_v29 }
 0x661   :  { %v532_v5 = vmax.f32 %v530_v30, 0.0 }
 0x663   :  { %709 = vmatmul.msk.f32.vlgmr.msra.gmra.mxu1 %vm261_vm4, %v532_v5 }
 0x6e0   :  { %v554_v26 = vpop.f32.mrf.mxu1 }
 0x6e1   :  { %v557_v27 = vadd.f32 %v554_v26, %v533_v6 }
 0x6e3   :  { %v558_v31 = vadd.f32 %v1068_v41, %v557_v27 }
 0x6e5   :  { %560 = vst [vmem:[#allocation3 + $0x28] sm:$0xff] %v558_v31  ;;  %v563_v33 = vmul.f32 0.875, %v558_v31 }
 0x6e7   :  { %v564_v35 = vadd.f32 %v563_v33, %v562_v32 }
 0x6e9   :  { %v565_v36 = vsel %vm561_vm0, %v564_v35, %v558_v31 }
 0x6ea   :  { %582 = vmatmul.f32.vlgmr.msra.gmra.mxu3 %v565_v36  ;;  %v587_v42 = vmul.f32 %v1060_v38, %v565_v36 }
 0x76d   :  { %v583_v37 = vpop.f32.mrf.mxu3 }
 0x76e   :  { %v584_v39 = vadd.f32 %v1041_v34, %v583_v37 }
 0x770   :  { %v586_v40 = vmax.f32 %v584_v39, 0.0 }
 0x772   :  { %710 = vmatmul.msk.f32.vlgmr.msrb.gmra.mxu1 %vm261_vm4, %v586_v40 }
 0x7ef   :  { %v608_v43 = vpop.f32.mrf.mxu1 }
 0x7f0   :  { %v611_v44 = vadd.f32 %v608_v43, %v587_v42 }
 0x7f2   :  { %v612_v45 = vadd.f32 %v1068_v41, %v611_v44 }
 0x7f4   :  { %614 = vst [vmem:[#allocation3 + $0x30] sm:$0xff] %v612_v45  ;;  %v617_v47 = vmul.f32 0.875, %v612_v45 }
 0x7f6   :  { %v618_v49 = vadd.f32 %v617_v47, %v616_v46 }
 0x7f8   :  { %v619_v50 = vsel %vm615_vm1, %v618_v49, %v612_v45 }
 0x7f9   :  { %636 = vmatmul.f32.vlgmr.msra.gmra.mxu2 %v619_v50  ;;  %v641_v54 = vmul.f32 %v1060_v38, %v619_v50 }
 0x87c   :  { %v637_v51 = vpop.f32.mrf.mxu2 }
 0x87d   :  { %v638_v52 = vadd.f32 %v1041_v34, %v637_v51 }
 0x87f   :  { %v640_v53 = vmax.f32 %v638_v52, 0.0 }
 0x881   :  { %711 = vmatmul.msk.f32.vlgmr.msrb.gmra.mxu0 %vm261_vm4, %v640_v53 }
 0x8fe   :  { %v662_v48 = vpop.f32.mrf.mxu0 }
 0x8ff   :  { %v665_v55 = vadd.f32 %v662_v48, %v641_v54 }
 0x901   :  { %v666_v56 = vadd.f32 %v1068_v41, %v665_v55 }
 0x903   :  { %668 = vst [vmem:[#allocation3 + $0x38] sm:$0xff] %v666_v56 }
 0x904   :  { %682 = dma.vmem_to_hbm [thread:$0]  %s675_s18, 1024, %s677_s21, [#allocation4], %s748_s22, %s748_s22, %s749_s23  }
 0x905   :  { %744 = dma.done.wait [#allocation4], 1024  }
 0x906   :  { %745 = vsyncadd [#allocation4], 4294966272 }
 0x907   :  { %687 = vsyncpa [#allocation4], 1 }

</bundles_post_ra>
